<compile_context>
chip_gen: v6e
topology: v6e:2x2x1
jax: 0.10.0
libtpu: 0.0.40
codegen_flags: <defaults>
</compile_context>

<pallas_src>
import jax
import jax.numpy as jnp
from jax.experimental import pallas as pl
from jax.experimental.pallas import tpu as pltpu

IN_DIM = 82
HID_DIM = 64
OUT_DIM = 41
DEFAULT_TILE_B = 8192   # rows per grid step; ~12 MiB of double-buffered VMEM
MIN_SPLIT_B = 2048      # below this, don't force a 2-block split


def _round_up(n, m):
    return ((n + m - 1) // m) * m


def _pick_tile_b(B, max_tile=DEFAULT_TILE_B, min_split=MIN_SPLIT_B):
    """Balanced batch tile: amortizes grid-step overhead, avoids up-to-2x
    padding waste on adversarial B, and keeps >=2 blocks for large B so both
    v7x TensorCores are used."""
    B = max(int(B), 1)
    n_blocks = max(-(-B // max_tile), 1)
    if n_blocks == 1 and B >= min_split:
        n_blocks = 2
    return min(max_tile, _round_up(-(-B // n_blocks), 8))


def _mlp_kernel(x_ref, w1_ref, b1_ref, w2_ref, b2_ref, o_ref):
    # Cast the f32 input tile to bf16 in-kernel (VPU op, hidden under DMA).
    x = x_ref[...].astype(jnp.bfloat16)
    # First linear (bf16 MXU matmul, f32 accumulation) + bias + ReLU.
    h = jnp.dot(x, w1_ref[...], preferred_element_type=jnp.float32)
    h = jnp.maximum(h + b1_ref[...], 0.0)                 # (tile_b, 64) + (1, 64)
    # Second linear; hidden activation cast to bf16, f32 accumulation.
    y = jnp.dot(h.astype(jnp.bfloat16), w2_ref[...],
                preferred_element_type=jnp.float32)
    o_ref[...] = (y + b2_ref[...]).astype(o_ref.dtype)    # (tile_b, 41)


def prepare_params(w1, b1, w2, b2):
    """One-time parameter prep (hoisted out of the per-call forward)."""
    return (w1.astype(jnp.bfloat16),
            b1.reshape(1, HID_DIM).astype(jnp.float32),
            w2.astype(jnp.bfloat16),
            b2.reshape(1, OUT_DIM).astype(jnp.float32))


def combiner_model_forward(x, params, *, max_tile_b=DEFAULT_TILE_B):
    """x: (B, 82) f32. params: output of prepare_params. Returns (B, 41) f32."""
    B = x.shape[0]
    w1_bf, b1_2d, w2_bf, b2_2d = params

    tile_b = _pick_tile_b(B, max_tile_b)
    grid = (pl.cdiv(B, tile_b),)

    cost = pl.CostEstimate(
        flops=2 * B * (IN_DIM * HID_DIM + HID_DIM * OUT_DIM),
        transcendentals=0,
        bytes_accessed=(B * IN_DIM * 4 + B * OUT_DIM * 4          # x read, out write
                        + (IN_DIM * HID_DIM + HID_DIM * OUT_DIM) * 2
                        + (HID_DIM + OUT_DIM) * 4),
    )

    return pl.pallas_call(
        _mlp_kernel,
        out_shape=jax.ShapeDtypeStruct((B, OUT_DIM), jnp.float32),
        grid_spec=pl.GridSpec(
            grid=grid,
            in_specs=[
                # x: tiled along batch (ragged last block handled by Pallas).
                pl.BlockSpec((tile_b, IN_DIM), lambda i: (i, 0)),
                # Weights / biases: constant index_map -> stay VMEM-resident.
                pl.BlockSpec((IN_DIM, HID_DIM), lambda i: (0, 0)),
                pl.BlockSpec((1, HID_DIM), lambda i: (0, 0)),
                pl.BlockSpec((HID_DIM, OUT_DIM), lambda i: (0, 0)),
                pl.BlockSpec((1, OUT_DIM), lambda i: (0, 0)),
            ],
            out_specs=pl.BlockSpec((tile_b, OUT_DIM), lambda i: (i, 0)),
        ),
        compiler_params=pltpu.CompilerParams(
            dimension_semantics=("parallel",),
            vmem_limit_bytes=32 * 1024 * 1024,
        ),
        cost_estimate=cost,
    )(x, w1_bf, b1_2d, w2_bf, b2_2d)


def _init_params(key):
    # Deterministic synthetic init mimicking PyTorch nn.Linear's uniform init:
    # U(-1/sqrt(fan_in), 1/sqrt(fan_in)) for both weight and bias.
    k1, k2, k3, k4 = jax.random.split(key, 4)
    bound1 = 1.0 / jnp.sqrt(IN_DIM)
    bound2 = 1.0 / jnp.sqrt(HID_DIM)
    # Stored as (in, out) = transpose of PyTorch's (out, in) weight layout.
    w1 = jax.random.uniform(k1, (IN_DIM, HID_DIM), jnp.float32, -bound1, bound1)
    b1 = jax.random.uniform(k2, (HID_DIM,), jnp.float32, -bound1, bound1)
    w2 = jax.random.uniform(k3, (HID_DIM, OUT_DIM), jnp.float32, -bound2, bound2)
    b2 = jax.random.uniform(k4, (OUT_DIM,), jnp.float32, -bound2, bound2)
    return w1, b1, w2, b2


if __name__ == "__main__":
    key = jax.random.PRNGKey(0)
    k_params, k_x = jax.random.split(key)

    batch = 8
    x = jax.random.normal(k_x, (batch, IN_DIM), jnp.float32)
    w1, b1, w2, b2 = _init_params(k_params)

    params = prepare_params(w1, b1, w2, b2)   # one-time weight prep
    out = combiner_model_forward(x, params)
    out = jax.block_until_ready(out)
    assert out.shape == (batch, OUT_DIM)
    assert out.dtype == jnp.float32

    # Reference 1: same bf16 input/weight/activation quantization as the kernel
    # (tight check).
    xb = x.astype(jnp.bfloat16).astype(jnp.float32)
    w1b = w1.astype(jnp.bfloat16).astype(jnp.float32)
    w2b = w2.astype(jnp.bfloat16).astype(jnp.float32)
    h_ref = jnp.maximum(xb @ w1b + b1, 0.0)
    ref_bf16 = h_ref.astype(jnp.bfloat16).astype(jnp.float32) @ w2b + b2
    assert jnp.allclose(out, ref_bf16, atol=2e-3, rtol=2e-3), \
        float(jnp.max(jnp.abs(out - ref_bf16)))

    # Reference 2: full-precision PyTorch-equivalent forward (loose check,
    # accounts for the in-kernel bf16 casts).
    ref_f32 = jnp.maximum(x @ w1 + b1, 0.0) @ w2 + b2
    assert jnp.allclose(out, ref_f32, atol=2e-2, rtol=2e-2), \
        float(jnp.max(jnp.abs(out - ref_f32)))

    # Exercise the ragged-last-block / multi-block path once as well.
    big_b = 2050  # not a multiple of the tile, forces masked last block
    x_big = jax.random.normal(k_x, (big_b, IN_DIM), jnp.float32)
    out_big = jax.block_until_ready(combiner_model_forward(x_big, params))
    ref_big = jnp.maximum(x_big @ w1 + b1, 0.0) @ w2 + b2
    assert out_big.shape == (big_b, OUT_DIM)
    assert jnp.allclose(out_big, ref_big, atol=3e-2, rtol=3e-2), \
        float(jnp.max(jnp.abs(out_big - ref_big)))

    print("KERNEL_OK")
</pallas_src>

<mosaic_0001>
module attributes {stable_mosaic.version = 11 : i64} {
  func.func @_mlp_kernel(%arg0: i32, %arg1: memref<8x82xf32, #tpu.memory_space<vmem>>, %arg2: memref<82x64xbf16, #tpu.memory_space<vmem>>, %arg3: memref<1x64xf32, #tpu.memory_space<vmem>>, %arg4: memref<64x41xbf16, #tpu.memory_space<vmem>>, %arg5: memref<1x41xf32, #tpu.memory_space<vmem>>, %arg6: memref<8x41xf32, #tpu.memory_space<vmem>>) attributes {dimension_semantics = [#tpu.dimension_semantics<parallel>], iteration_bounds = array<i64: 1>, scalar_prefetch = 0 : i64, scratch_operands = 0 : i64, tpu.core_type = #tpu.core_type<tc>, window_params = [{transform_indices = @transform_0, window_bounds = array<i64: 8, 82>}, {pipeline_mode = #tpu.pipeline_mode<synchronous>, transform_indices = @transform_1, window_bounds = array<i64: 82, 64>}, {pipeline_mode = #tpu.pipeline_mode<synchronous>, transform_indices = @transform_2, window_bounds = array<i64: 1, 64>}, {pipeline_mode = #tpu.pipeline_mode<synchronous>, transform_indices = @transform_3, window_bounds = array<i64: 64, 41>}, {pipeline_mode = #tpu.pipeline_mode<synchronous>, transform_indices = @transform_4, window_bounds = array<i64: 1, 41>}, {transform_indices = @transform_5, window_bounds = array<i64: 8, 41>}]} {
    %c0 = arith.constant 0 : index
    %c0_0 = arith.constant 0 : index
    %0 = vector.load %arg1[%c0, %c0_0] : memref<8x82xf32, #tpu.memory_space<vmem>>, vector<8x82xf32>
    %1 = arith.truncf %0 : vector<8x82xf32> to vector<8x82xbf16>
    %c0_1 = arith.constant 0 : index
    %c0_2 = arith.constant 0 : index
    %2 = vector.load %arg2[%c0_1, %c0_2] : memref<82x64xbf16, #tpu.memory_space<vmem>>, vector<82x64xbf16>
    %cst = arith.constant dense<0.000000e+00> : vector<8x64xf32>
    %3 = tpu.matmul %1, %2, %cst {dimension_numbers = #tpu.dot_dimension_numbers<[1], [0], [0], [1], [0, 0, 1, 1], [], []>} : vector<8x82xbf16>, vector<82x64xbf16>, vector<8x64xf32> -> vector<8x64xf32>
    %c0_3 = arith.constant 0 : index
    %c0_4 = arith.constant 0 : index
    %4 = vector.load %arg3[%c0_3, %c0_4] : memref<1x64xf32, #tpu.memory_space<vmem>>, vector<1x64xf32>
    %5 = vector.broadcast %4 : vector<1x64xf32> to vector<8x64xf32>
    %6 = arith.addf %3, %5 : vector<8x64xf32>
    %cst_5 = arith.constant 0.000000e+00 : f32
    %7 = vector.broadcast %cst_5 : f32 to vector<8x64xf32>
    %8 = arith.maximumf %6, %7 : vector<8x64xf32>
    %9 = arith.truncf %8 : vector<8x64xf32> to vector<8x64xbf16>
    %c0_6 = arith.constant 0 : index
    %c0_7 = arith.constant 0 : index
    %10 = vector.load %arg4[%c0_6, %c0_7] : memref<64x41xbf16, #tpu.memory_space<vmem>>, vector<64x41xbf16>
    %cst_8 = arith.constant dense<0.000000e+00> : vector<8x41xf32>
    %11 = tpu.matmul %9, %10, %cst_8 {dimension_numbers = #tpu.dot_dimension_numbers<[1], [0], [0], [1], [0, 0, 1, 1], [], []>} : vector<8x64xbf16>, vector<64x41xbf16>, vector<8x41xf32> -> vector<8x41xf32>
    %c0_9 = arith.constant 0 : index
    %c0_10 = arith.constant 0 : index
    %12 = vector.load %arg5[%c0_9, %c0_10] : memref<1x41xf32, #tpu.memory_space<vmem>>, vector<1x41xf32>
    %13 = vector.broadcast %12 : vector<1x41xf32> to vector<8x41xf32>
    %14 = arith.addf %11, %13 : vector<8x41xf32>
    %c0_11 = arith.constant 0 : index
    %c0_12 = arith.constant 0 : index
    %15 = vector.load %arg6[%c0_11, %c0_12] : memref<8x41xf32, #tpu.memory_space<vmem>>, vector<8x41xf32>
    tpu.vector_store %arg6[%c0_11, %c0_12], %14 {strides = array<i32>} : memref<8x41xf32, #tpu.memory_space<vmem>>, vector<8x41xf32>,
    return
  }
  func.func @transform_0(%arg0: i32) -> (i32, i32) {
    %c0_i32 = arith.constant 0 : i32
    %c0_i32_0 = arith.constant 0 : i32
    return %arg0, %c0_i32 : i32, i32
  }
  func.func @transform_1(%arg0: i32) -> (i32, i32) {
    %c0_i32 = arith.constant 0 : i32
    %c0_i32_0 = arith.constant 0 : i32
    %c0_i32_1 = arith.constant 0 : i32
    return %c0_i32, %c0_i32_0 : i32, i32
  }
  func.func @transform_2(%arg0: i32) -> (i32, i32) {
    %c0_i32 = arith.constant 0 : i32
    %c0_i32_0 = arith.constant 0 : i32
    %c0_i32_1 = arith.constant 0 : i32
    return %c0_i32, %c0_i32_0 : i32, i32
  }
  func.func @transform_3(%arg0: i32) -> (i32, i32) {
    %c0_i32 = arith.constant 0 : i32
    %c0_i32_0 = arith.constant 0 : i32
    %c0_i32_1 = arith.constant 0 : i32
    return %c0_i32, %c0_i32_0 : i32, i32
  }
  func.func @transform_4(%arg0: i32) -> (i32, i32) {
    %c0_i32 = arith.constant 0 : i32
    %c0_i32_0 = arith.constant 0 : i32
    %c0_i32_1 = arith.constant 0 : i32
    return %c0_i32, %c0_i32_0 : i32, i32
  }
  func.func @transform_5(%arg0: i32) -> (i32, i32) {
    %c0_i32 = arith.constant 0 : i32
    %c0_i32_0 = arith.constant 0 : i32
    return %arg0, %c0_i32 : i32, i32
  }
}

</mosaic_0001>

<bundles_post_ra>
// kernel: tpu_custom_call.1
= control target key start
LH: loop header
LB: loop body
LE: loop exit
PB: predicated region body
PF: predicated region fallthrough
CT: control target
= control target key end

     0   :  { %v313_v1 = vmov 0.0   ;;  %vm79_vm0 = vcmask 1040384   ;;  %vm314_vm1 = vmmov 0   ;;  %s388_s0 = inlined_call_operand.vmem [shape: f32[8,82], index: 0, kind: input, shape index: {}]   ;;  %s389_s1 = inlined_call_operand.vmem [shape: bf16[82,64], index: 1, kind: input, shape index: {}]   ;;  %s390_s2 = inlined_call_operand.vmem [shape: f32[1,64], index: 2, kind: input, shape index: {}]   ;;  %s391_s3 = inlined_call_operand.vmem [shape: bf16[64,41], index: 3, kind: input, shape index: {}]   ;;  %s392_s4 = inlined_call_operand.vmem [shape: f32[1,41], index: 4, kind: input, shape index: {}]   ;;  %s393_s5 = inlined_call_operand.hbm [shape: f32[8,41], index: 5, kind: output, shape index: {}]  }
   0x1   :  { %v281_v0 = vld [vmem:[%s389_s1 + $0x28] ss:$0 sps:$4 sm:$0x11]   ;;  %250 = vmatprep.subr.bf16.mxu0 %v313_v1  ;;  %266 = vmatprep.subr.bf16.mxu1 %v313_v1  ;;  %v282_v3 = vld [vmem:[%s389_s1 + $0x20] sm:$0xff]   ;;  %v283_v4 = vld [vmem:[%s389_s1 + $0x18] sm:$0xff]  }
   0x2   :  { %v81_v2 = vsel %vm79_vm0, %v281_v0, 0  ;;  %262 = vmatprep.mubr.msk.bf16.mxu0 %vm314_vm1, %v313_v1  ;;  %274 = vmatprep.mubr.msk.bf16.mxu1 %vm314_vm1, %v313_v1  ;;  %v287_v5 = vld [vmem:[%s391_s3 + $0x18] sm:$0xff]   ;;  %v288_v6 = vld [vmem:[%s391_s3 + $0x10] sm:$0xff]  }
   0x3   :  { %251 = vmatpush3.bf16.msra.mxu0 %v81_v2  ;;  %267 = vmatpush3.bf16.msra.mxu1 %v287_v5 }
   0x4   :  { %252 = vmatprep.subr.bf16.mxu0 %v313_v1  ;;  %268 = vmatprep.subr.bf16.mxu1 %v313_v1 }
   0x7   :  { %253 = vmatpush3.bf16.msra.mxu0 %v282_v3 }
   0x8   :  { %254 = vmatprep.subr.bf16.mxu0 %v313_v1 }
   0x9   :  { %10 = vsyncpa [#allocation3], 0  ;;  %v284_v7 = vld [vmem:[%s389_s1 + $0x10] sm:$0xff]   ;;  %269 = vmatpush3.bf16.msra.mxu1 %v288_v6  ;;  %v285_v8 = vld [vmem:[%s389_s1 + $0x8] sm:$0xff]   ;;  %vm75_vm2 = vcmask 670720   ;;  %vm164_vm3 = vcmask 523264  }
   0xa   :  { %270 = vmatprep.subr.bf16.mxu1 %v313_v1  ;;  %v286_v9 = vld [vmem:[%s389_s1] sm:$0xff]   ;;  %v289_v12 = vld [vmem:[%s391_s3 + $0x8] sm:$0xff]   ;;  %s315_s17 = smov [#allocation2]   ;;  %vm208_vm4 = vcmask 334848  }
   0xb   :  { %255 = vmatpush3.bf16.msra.mxu0 %v283_v4  ;;  %v22_v10 = vld [vmem:[%s388_s0] sm:$0xff] }
   0xc   :  { %256 = vmatprep.subr.bf16.mxu0 %v313_v1  ;;  %v23_v11 = vpack.c.bf16 %v22_v10, %v22_v10  ;;  %v290_v13 = vld [vmem:[%s391_s3] sm:$0xff]   ;;  %s216_s3 = sshll.u32 %s315_s17, 4  ;;  %s217_s3 = int_to_ptr.vmem [resolvable:$true] %s216_s3 }
   0xd   :  { %271 = vmatpush3.bf16.msra.mxu1 %v289_v12  ;;  %v224_v14 = vld [vmem:[%s390_s2] ss:$0 sm:$0xff]  ;;  %s291_s2 = scalar_lea.vmem %s217_s3, 128  ;;  %p296_p1 = scmp.lt.s32.totalorder %s217_s3, %s217_s3 }
   0xe   :  { %272 = vmatprep.subr.bf16.mxu1 %v313_v1  ;;  %v232_v22 = vld [vmem:[%s392_s4] ss:$0 sm:$0xff]  ;;  %p292_p0 = scmp.ne.s32.totalorder %s217_s3, %s291_s2  ;;  %p297_p2 = scmp.lt.s32.totalorder %s291_s2, %s291_s2 }
   0xf   :  { %257 = vmatpush3.bf16.msra.mxu0 %v284_v7 }
  0x10   :  { %258 = vmatprep.subr.bf16.mxu0 %v313_v1  ;;  %p298_p3 = por %p297_p2, %p296_p1 }
  0x11   :  { %273 = vmatpush3.bf16.msra.mxu1 %v290_v13 }
  0x12   :  { %p299_p4 = pnand %p298_p3, %p292_p0 }
  0x13   :  { %259 = vmatpush3.bf16.msra.mxu0 %v285_v8 }
  0x14   :  { %260 = vmatprep.subr.bf16.mxu0 %v313_v1 }
  0x17   :  { %261 = vmatpush3.bf16.msra.mxu0 %v286_v9 }
  0x1a   :  { %263 = vmatmul.mubr.msk.bf16.vlgmr.msra.gmra.mxu0 %vm75_vm2, %v23_v11 }
  0xda   :  { %v117_v15 = vpop.f32.mrf.mxu0 }
  0xdb   :  { %v118_v16 = vadd.f32 %v224_v14, %v117_v15 }
  0xdc   :  { %v264_v17 = vpop.f32.mrf.mxu0 }
  0xdd   :  { %v123_v18 = vmax.f32 %v118_v16, 0.0 }
  0xde   :  { %v120_v19 = vpop.f32.mrf.mxu0 }
  0xdf   :  { %v124_v20 = vpack.c.bf16 %v123_v18, %v123_v18 }
  0xe0   :  { %v265_v21 = vpop.f32.mrf.mxu0 }
  0xe1   :  { %275 = vmatmul.mubr.msk.bf16.vlgmr.msra.gmra.mxu1 %vm164_vm3, %v124_v20 }
 0x1a1   :  { %v202_v23 = vpop.f32.mrf.mxu1 }
 0x1a2   :  { %v203_v24 = vadd.f32 %v232_v22, %v202_v23 }
 0x1a3   :  { %v276_v25 = vpop.f32.mrf.mxu1 }
 0x1a4   :  { %209 = vst.msk [vmem:[#allocation2] sm:$0xff] %vm208_vm4, %v203_v24 }
 0x1a5   :  { %v205_v26 = vpop.f32.mrf.mxu1 }
 0x1a6   :  { %302 = shalt.err (!%p299_p4)
}
 0x1a7   :  { %219 = dma.vmem_to_hbm [thread:$0]  %s217_s3, 128, %s393_s5, [#allocation3]   ;;  %v277_v27 = vpop.f32.mrf.mxu1 }
 0x1a8   :  { %311 = dma.done.wait [#allocation3], 128  }
 0x1a9   :  { %312 = vsyncadd [#allocation3], 4294967168 }
 0x1aa   :  { %223 = vsyncpa [#allocation3], 1 }

</bundles_post_ra>
